<compile_context>
chip_gen: v7x
topology: tpu7x:2x2x1
jax: 0.10.0
libtpu: 0.0.40
codegen_flags: <defaults>
</compile_context>

<pallas_src>
import jax
import jax.numpy as jnp
from jax.experimental import pallas as pl
from jax.experimental.pallas import tpu as pltpu

MASK_VALUE = -1000.0
LANE = 128  # TPU lane width (last dim)


def _round_up(x, m):
    return (x + m - 1) // m * m


def _pick_tile(total, candidates):
    for c in candidates:
        if total % c == 0:
            return c
    return None


# ----------------------------- kernels --------------------------------------


def _linear_masked_kernel(x_ref, w_ref, b_ref, o_ref):
    # x_ref: [tm, IN] f32 (cast to bf16 in-kernel)
    # w_ref: [IN, tn] bf16 (pre-transposed, mask-folded, lane-padded)
    # b_ref: [1,  tn] f32  (mask_value in inactive / padded columns)
    # o_ref: [tm, tn] f32
    x = x_ref[...].astype(w_ref.dtype)
    acc = jnp.dot(x, w_ref[...], preferred_element_type=jnp.float32)
    o_ref[...] = acc + b_ref[...]


def _linear_masked_kernel_ktiled(x_ref, w_ref, b_ref, o_ref, acc_ref):
    # Same as above, with the contraction (in_features) dim tiled over grid
    # axis 2 and accumulated in an f32 VMEM scratch.
    k = pl.program_id(2)

    @pl.when(k == 0)
    def _():
        acc_ref[...] = jnp.zeros_like(acc_ref)

    x = x_ref[...].astype(w_ref.dtype)
    acc_ref[...] += jnp.dot(x, w_ref[...], preferred_element_type=jnp.float32)

    @pl.when(k == pl.num_programs(2) - 1)
    def _():
        o_ref[...] = acc_ref[...] + b_ref[...]


# --------------------------- param preparation ------------------------------


def prepare_incremental_classifier_params(weight, bias, active_units,
                                          mask_value=MASK_VALUE,
                                          compute_dtype=jnp.bfloat16):
    """One-time (per adaptation) parameter prep, hoisted out of forward().

    - Transposes the PyTorch-layout weight [OUT, IN] -> [IN, OUT].
    - Folds masking into the params: inactive columns get zero weight and
      bias = mask_value, so x @ w + b reproduces the masked output exactly.
    - Pads OUT to a multiple of 128 (lane-dense output); padded columns are
      also masked and sliced away by the caller.
    - Casts the MXU weight operand to bf16; bias stays f32.
    """
    out_features, in_features = weight.shape
    active = active_units.astype(bool)

    w_t = jnp.where(active[None, :], weight.T, 0.0)               # [IN, OUT]
    b = jnp.where(active, bias, mask_value).astype(jnp.float32)   # [OUT]

    out_padded = _round_up(out_features, LANE)
    w_prepared = jnp.zeros((in_features, out_padded), dtype=compute_dtype)
    w_prepared = w_prepared.at[:, :out_features].set(w_t.astype(compute_dtype))
    b_prepared = jnp.full((1, out_padded), mask_value, dtype=jnp.float32)
    b_prepared = b_prepared.at[:, :out_features].set(b)
    return w_prepared, b_prepared


# ------------------------------- forward ------------------------------------


def incremental_classifier_forward(x, w_prepared, b_prepared, out_features):
    """Hot-path forward: x [..., IN] -> logits [..., out_features] (f32)."""
    lead = x.shape[:-1]
    IN = x.shape[-1]
    x2 = x.reshape(-1, IN)
    B = x2.shape[0]

    IN_w, OUT_P = w_prepared.shape
    assert IN == IN_w

    # ---- batch tiling: no pad/copy when the batch fits a single tile ----
    if B <= 256:
        tm = B
        B_P = B
        x_p = x2
    else:
        tm = 256
        B_P = _round_up(B, tm)
        x_p = jnp.pad(x2, ((0, B_P - B), (0, 0))) if B_P != B else x2

    # ---- class tiling: widest lane-dense tile dividing padded OUT ----
    tn = _pick_tile(OUT_P, (512, 256, 128))

    # ---- contraction tiling only when in_features is large ----
    tk = _pick_tile(IN, (2048, 1024, 512, 256)) if IN > 2048 else None

    if tk is None:
        grid = (B_P // tm, OUT_P // tn)
        out_padded = pl.pallas_call(
            _linear_masked_kernel,
            out_shape=jax.ShapeDtypeStruct((B_P, OUT_P), jnp.float32),
            grid_spec=pltpu.PrefetchScalarGridSpec(
                num_scalar_prefetch=0,
                grid=grid,
                in_specs=[
                    pl.BlockSpec((tm, IN), lambda i, j: (i, 0)),   # x rows
                    pl.BlockSpec((IN, tn), lambda i, j: (0, j)),   # weight cols
                    pl.BlockSpec((1, tn), lambda i, j: (0, j)),    # bias cols
                ],
                out_specs=pl.BlockSpec((tm, tn), lambda i, j: (i, j)),
            ),
            compiler_params=pltpu.CompilerParams(
                dimension_semantics=("parallel", "parallel")),
        )(x_p, w_prepared, b_prepared)
    else:
        grid = (B_P // tm, OUT_P // tn, IN // tk)
        out_padded = pl.pallas_call(
            _linear_masked_kernel_ktiled,
            out_shape=jax.ShapeDtypeStruct((B_P, OUT_P), jnp.float32),
            grid_spec=pltpu.PrefetchScalarGridSpec(
                num_scalar_prefetch=0,
                grid=grid,
                in_specs=[
                    pl.BlockSpec((tm, tk), lambda i, j, k: (i, k)),
                    pl.BlockSpec((tk, tn), lambda i, j, k: (k, j)),
                    pl.BlockSpec((1, tn), lambda i, j, k: (0, j)),
                ],
                out_specs=pl.BlockSpec((tm, tn), lambda i, j, k: (i, j)),
                scratch_shapes=[pltpu.VMEM((tm, tn), jnp.float32)],
            ),
            compiler_params=pltpu.CompilerParams(
                dimension_semantics=("parallel", "parallel", "arbitrary")),
        )(x_p, w_prepared, b_prepared)

    out = out_padded[:B, :out_features]
    return out.reshape(*lead, out_features)


# --------------------------------- demo -------------------------------------

if __name__ == "__main__":
    # Small shapes consistent with the module: batch=8, in_features=32,
    # out_features=4 (classifier expanded from 2 -> 4 classes).
    B, IN_FEATURES, OUT_FEATURES = 8, 32, 4

    key = jax.random.PRNGKey(0)
    kx, kw, kb = jax.random.split(key, 3)

    x = jax.random.normal(kx, (B, IN_FEATURES), dtype=jnp.float32)

    # nn.Linear-style uniform(-1/sqrt(in), 1/sqrt(in)) init.
    bound = 1.0 / jnp.sqrt(jnp.float32(IN_FEATURES))
    weight = jax.random.uniform(
        kw, (OUT_FEATURES, IN_FEATURES), minval=-bound, maxval=bound,
        dtype=jnp.float32)
    bias = jax.random.uniform(
        kb, (OUT_FEATURES,), minval=-bound, maxval=bound, dtype=jnp.float32)

    # Classes 0 and 2 have been seen; 1 and 3 are inactive -> mask_value.
    active_units = jnp.array([True, False, True, False])

    # Parameter prep is done once (at adaptation time), not per forward call.
    w_prep, b_prep = prepare_incremental_classifier_params(
        weight, bias, active_units)

    out = incremental_classifier_forward(x, w_prep, b_prep, OUT_FEATURES)
    out = jax.block_until_ready(out)

    # Reference: PyTorch module semantics in f32.
    ref = x @ weight.T + bias
    ref = jnp.where(active_units[None, :], ref, MASK_VALUE)

    assert out.shape == ref.shape
    # Masked columns must be exactly mask_value (x @ 0 + mask_value).
    masked = ~active_units[None, :]
    assert bool(jnp.all(jnp.where(masked, out == MASK_VALUE, True))), out
    # Active columns: bf16 MXU operands with f32 accumulation -> bf16-level tol.
    assert jnp.allclose(out, ref, atol=3e-2, rtol=3e-2), (out, ref)

    print("KERNEL_OK")
</pallas_src>

<mosaic_0001>
module attributes {stable_mosaic.version = 11 : i64} {
  func.func @_linear_masked_kernel(%arg0: i32, %arg1: i32, %arg2: memref<8x32xf32, #tpu.memory_space<vmem>>, %arg3: memref<32x128xbf16, #tpu.memory_space<vmem>>, %arg4: memref<1x128xf32, #tpu.memory_space<vmem>>, %arg5: memref<8x128xf32, #tpu.memory_space<vmem>>) attributes {dimension_semantics = [#tpu.dimension_semantics<parallel>, #tpu.dimension_semantics<parallel>], iteration_bounds = array<i64: 1, 1>, scalar_prefetch = 0 : i64, scratch_operands = 0 : i64, tpu.core_type = #tpu.core_type<tc>, window_params = [{transform_indices = @transform_0, window_bounds = array<i64: 8, 32>}, {transform_indices = @transform_1, window_bounds = array<i64: 32, 128>}, {transform_indices = @transform_2, window_bounds = array<i64: 1, 128>}, {transform_indices = @transform_3, window_bounds = array<i64: 8, 128>}]} {
    %c0 = arith.constant 0 : index
    %c0_0 = arith.constant 0 : index
    %0 = vector.load %arg2[%c0, %c0_0] : memref<8x32xf32, #tpu.memory_space<vmem>>, vector<8x32xf32>
    %1 = arith.truncf %0 : vector<8x32xf32> to vector<8x32xbf16>
    %c0_1 = arith.constant 0 : index
    %c0_2 = arith.constant 0 : index
    %2 = vector.load %arg3[%c0_1, %c0_2] : memref<32x128xbf16, #tpu.memory_space<vmem>>, vector<32x128xbf16>
    %cst = arith.constant dense<0.000000e+00> : vector<8x128xf32>
    %3 = tpu.matmul %1, %2, %cst {dimension_numbers = #tpu.dot_dimension_numbers<[1], [0], [0], [1], [0, 0, 1, 1], [], []>} : vector<8x32xbf16>, vector<32x128xbf16>, vector<8x128xf32> -> vector<8x128xf32>
    %c0_3 = arith.constant 0 : index
    %c0_4 = arith.constant 0 : index
    %4 = vector.load %arg4[%c0_3, %c0_4] : memref<1x128xf32, #tpu.memory_space<vmem>>, vector<1x128xf32>
    %5 = vector.broadcast %4 : vector<1x128xf32> to vector<8x128xf32>
    %6 = arith.addf %3, %5 : vector<8x128xf32>
    %c0_5 = arith.constant 0 : index
    %c0_6 = arith.constant 0 : index
    %7 = vector.load %arg5[%c0_5, %c0_6] : memref<8x128xf32, #tpu.memory_space<vmem>>, vector<8x128xf32>
    tpu.vector_store %arg5[%c0_5, %c0_6], %6 {strides = array<i32>} : memref<8x128xf32, #tpu.memory_space<vmem>>, vector<8x128xf32>,
    return
  }
  func.func @transform_0(%arg0: i32, %arg1: i32) -> (i32, i32) {
    %c0_i32 = arith.constant 0 : i32
    %c0_i32_0 = arith.constant 0 : i32
    return %arg0, %c0_i32 : i32, i32
  }
  func.func @transform_1(%arg0: i32, %arg1: i32) -> (i32, i32) {
    %c0_i32 = arith.constant 0 : i32
    %c0_i32_0 = arith.constant 0 : i32
    return %c0_i32, %arg1 : i32, i32
  }
  func.func @transform_2(%arg0: i32, %arg1: i32) -> (i32, i32) {
    %c0_i32 = arith.constant 0 : i32
    %c0_i32_0 = arith.constant 0 : i32
    return %c0_i32, %arg1 : i32, i32
  }
  func.func @transform_3(%arg0: i32, %arg1: i32) -> (i32, i32) {
    %c0_i32 = arith.constant 0 : i32
    return %arg0, %arg1 : i32, i32
  }
}

</mosaic_0001>

<bundles_post_ra>
// kernel: tpu_custom_call.1
= control target key start
LH: loop header
LB: loop body
LE: loop exit
PB: predicated region body
PF: predicated region fallthrough
CT: control target
= control target key end

     0   :  { %8 = vsyncpa [#allocation3], 0  ;;  %s297_s0 = inlined_call_operand.hbm [shape: f32[8,32], index: 0, kind: input, shape index: {}]   ;;  %s298_s1 = inlined_call_operand.hbm [shape: bf16[32,128], index: 1, kind: input, shape index: {}]   ;;  %s299_s2 = inlined_call_operand.vmem [shape: f32[1,128], index: 2, kind: input, shape index: {}]   ;;  %s300_s3 = inlined_call_operand.hbm [shape: f32[8,128], index: 3, kind: output, shape index: {}]  }
   0x1   :  { %9 = vsyncpa [#allocation6], 0 }
   0x2   :  { %10 = vsyncpa [#allocation4], 0  ;;  %s224_s12 = smov [#allocation2]   ;;  %s225_s14 = smov [#allocation5]  }
   0x3   :  { %s17_s13 = sshll.u32 %s224_s12, 4  ;;  %s26_s15 = sshll.u32 %s225_s14, 4  ;;  %s18_s13 = int_to_ptr.vmem [resolvable:$true] %s17_s13  ;;  %s251_s15 = int_to_ptr.vmem [resolvable:$true] %s26_s15 }
   0x4   :  { %s152_s18 = scalar_lea.hbm %s297_s0, 128 }
   0x5   :  { %p153_p0 = scmp.ne.s32.totalorder %s297_s0, %s152_s18  ;;  %p156_p1 = scmp.lt.u32.totalorder %s152_s18, %s297_s0 }
   0x7   :  { %p158_p2 = pnand %p156_p1, %p153_p0 }
   0x9   :  { %161 = shalt.err (!%p158_p2)
}
   0xa   :  { %s162_s23 = scalar_lea.vmem %s18_s13, 128  ;;  %p167_p4 = scmp.lt.s32.totalorder %s18_s13, %s18_s13 }
   0xb   :  { %p163_p3 = scmp.ne.s32.totalorder %s18_s13, %s162_s23  ;;  %p168_p5 = scmp.lt.s32.totalorder %s162_s23, %s162_s23 }
   0xd   :  { %p169_p6 = por %p168_p5, %p167_p4 }
   0xf   :  { %p170_p7 = pnand %p169_p6, %p163_p3 }
  0x11   :  { %173 = shalt.err (!%p170_p7)
}
  0x12   :  { %20 = dma.hbm_to_vmem [thread:$0]  %s297_s0, 128, %s18_s13, [#allocation3]  }
  0x13   :  { %s174_s28 = scalar_lea.hbm %s298_s1, 256 }
  0x14   :  { %p175_p8 = scmp.ne.s32.totalorder %s298_s1, %s174_s28  ;;  %p178_p9 = scmp.lt.u32.totalorder %s174_s28, %s298_s1 }
  0x16   :  { %p180_p10 = pnand %p178_p9, %p175_p8 }
  0x18   :  { %183 = shalt.err (!%p180_p10)
}
  0x19   :  { %s184_s6 = scalar_lea.vmem %s251_s15, 256  ;;  %p189_p12 = scmp.lt.s32.totalorder %s251_s15, %s251_s15 }
  0x1a   :  { %p185_p11 = scmp.ne.s32.totalorder %s251_s15, %s184_s6  ;;  %p190_p13 = scmp.lt.s32.totalorder %s184_s6, %s184_s6 }
  0x1c   :  { %p191_p0 = por %p190_p13, %p189_p12 }
  0x1e   :  { %p192_p1 = pnand %p191_p0, %p185_p11 }
  0x20   :  { %195 = shalt.err (!%p192_p1)
}
  0x21   :  { %s226_s0 = smov 64   ;;  %s227_s7 = smov 4  }
  0x22   :  { %32 = dma.hbm_to_vmem [thread:$0]  %s298_s1, 256, %s251_s15, [#allocation6], %s226_s0, %s226_s0, %s227_s7  }
  0x23   :  { %218 = dma.done.wait [#allocation3], 128  }
  0x24   :  { %219 = vsyncadd [#allocation3], 4294967168 }
  0x25   :  { %220 = dma.done.wait [#allocation6], 256  }
  0x26   :  { %221 = vsyncadd [#allocation6], 4294967040  ;;  %v228_v0 = vmov 0.0   ;;  %vm229_vm0 = vmmov 0   ;;  %v150_v1 = vld [vmem:[#allocation5] sm:$0xff]   ;;  %v151_v2 = vld [vmem:[#allocation5 + $0x8] sm:$0xff]  }
  0x27   :  { %135 = vmatprep.subr.bf16.mxu0 %v228_v0  ;;  %139 = vmatprep.mubr.msk.bf16.mxu0 %vm229_vm0, %v228_v0  ;;  %v42_v3 = vld [vmem:[#allocation2] sm:$0xff]  ;;  %vm67_vm1 = vcmask 261120   ;;  %s230_s1 = smov [#allocation7]  }
  0x28   :  { %136 = vmatpush3.bf16.msra.mxu0 %v150_v1  ;;  %v43_v4 = vpack.c.bf16 %v42_v3, %v42_v3  ;;  %v128_v5 = vld [vmem:[%s299_s2] ss:$0 sm:$0xff]  ;;  %s118_s12 = sshll.u32 %s230_s1, 4  ;;  %s119_s12 = int_to_ptr.vmem [resolvable:$true] %s118_s12 }
  0x29   :  { %137 = vmatprep.subr.bf16.mxu0 %v228_v0  ;;  %s196_s13 = scalar_lea.vmem %s119_s12, 128  ;;  %p201_p3 = scmp.lt.s32.totalorder %s119_s12, %s119_s12 }
  0x2a   :  { %p197_p2 = scmp.ne.s32.totalorder %s119_s12, %s196_s13  ;;  %p202_p4 = scmp.lt.s32.totalorder %s196_s13, %s196_s13 }
  0x2c   :  { %138 = vmatpush3.bf16.msra.mxu0 %v151_v2  ;;  %p203_p5 = por %p202_p4, %p201_p3 }
  0x2e   :  { %p204_p6 = pnand %p203_p5, %p197_p2 }
  0x2f   :  { %140 = vmatmul.mubr.msk.bf16.vlgmr.msra.gmra.mrb[0].mxu0 %vm67_vm1, %v43_v4 }
 0x102   :  { %v105_v6 = vpop.f32.mrb[0].mxu0 }
 0x103   :  { %v106_v7 = vadd.f32 %v128_v5, %v105_v6  ;;  %v141_v8 = vpop.f32.mrb[1].mxu0 }
 0x104   :  { %v108_v9 = vpop.f32.mrb[2].mxu0 }
 0x105   :  { %111 = vst [vmem:[#allocation7] sm:$0xff] %v106_v7  ;;  %v142_v10 = vpop.f32.mrb[3].mxu0 }
 0x106   :  { %207 = shalt.err (!%p204_p6)
}
 0x107   :  { %s208_s2 = scalar_lea.hbm %s300_s3, 128 }
 0x108   :  { %p209_p7 = scmp.ne.s32.totalorder %s300_s3, %s208_s2  ;;  %p212_p8 = scmp.lt.u32.totalorder %s208_s2, %s300_s3 }
 0x10a   :  { %p214_p9 = pnand %p212_p8, %p209_p7 }
 0x10c   :  { %217 = shalt.err (!%p214_p9)
}
 0x10d   :  { %121 = dma.vmem_to_hbm [thread:$0]  %s119_s12, 128, %s300_s3, [#allocation4]  }
 0x10e   :  { %222 = dma.done.wait [#allocation4], 128  }
 0x10f   :  { %223 = vsyncadd [#allocation4], 4294967168 }
 0x110   :  { %125 = vsyncpa [#allocation3], 1 }
 0x111   :  { %126 = vsyncpa [#allocation6], 1 }
 0x112   :  { %127 = vsyncpa [#allocation4], 1 }

</bundles_post_ra>
